<compile_context>
chip_gen: v6e
topology: v6e:2x2x1
jax: 0.10.0
libtpu: 0.0.40
codegen_flags: <defaults>
</compile_context>

<pallas_src>
import functools

import jax
import jax.numpy as jnp
from jax.experimental import pallas as pl
from jax.experimental.pallas import tpu as pltpu

MARGIN = 1.0


def _vmem_capacity_bytes():
    try:
        return int(pltpu.get_tpu_info().vmem_capacity_bytes)
    except Exception:
        return 64 * 1024 * 1024  # conservative fallback (v7x-sized VMEM)


def _sublane_multiple(dtype):
    return {4: 8, 2: 16, 1: 32}.get(jnp.dtype(dtype).itemsize, 8)


def _pick_tile_b(batch, feat, dtype, per_block_bytes_cap):
    """Largest legal row tile whose (tile_b, D) block fits the per-block cap."""
    itemsize = jnp.dtype(dtype).itemsize
    mult = _sublane_multiple(dtype)
    rows_cap = max(per_block_bytes_cap // max(feat * itemsize, 1), 1)
    rows_cap = (rows_cap // mult) * mult
    rows_b = (batch // mult) * mult
    tile = min(rows_cap, rows_b)
    if tile <= 0:
        # Tiny batch (< one sublane tile) or huge feature dim: smallest legal block.
        tile = min(mult, batch)
    return tile


def _contrastive_loss_kernel(out1_ref, out2_ref, labels_ref, out_ref, *,
                             margin, batch, tile_b, steps_per_split):
    c = pl.program_id(0)   # parallel axis (one value per TensorCore on v7x)
    s = pl.program_id(1)   # arbitrary (reduction) axis

    # The (1, 1) output block is revisited across the arbitrary axis: it is the
    # accumulator.  Zero it on the first step of each split.
    @pl.when(s == 0)
    def _():
        out_ref[...] = jnp.zeros_like(out_ref)

    # Stream in the caller's dtype; upcast to f32 in-VMEM (v5e has no bf16 VALU).
    x1 = out1_ref[...].astype(jnp.float32)                      # (tile_b, D)
    x2 = out2_ref[...].astype(jnp.float32)
    lab = labels_ref[...].astype(jnp.float32)                   # (tile_b, 1)

    diff = x1 - x2
    sq_dist = jnp.sum(diff * diff, axis=1, keepdims=True)       # (tile_b, 1)
    dist = jnp.sqrt(sq_dist)
    hinge = jnp.maximum(jnp.float32(margin) - dist, 0.0)        # clamp(min=0)
    loss = lab * sq_dist + (1.0 - lab) * (hinge * hinge)        # (tile_b, 1)

    # Ragged-tail handling: mask rows past the true batch.  The index_map clamps
    # the block index, so those rows hold stale/duplicate data; select 0 for them
    # (a where, so garbage/NaN data cannot leak through).
    t = c * steps_per_split + s
    row = t * tile_b + jax.lax.broadcasted_iota(jnp.int32, (tile_b, 1), 0)
    loss = jnp.where(row < batch, loss, 0.0)

    # Fold to a single value and accumulate into the resident (1, 1) output block.
    out_ref[...] += jnp.sum(loss, axis=0, keepdims=True)


def contrastive_loss(out1, out2, labels, *, margin=MARGIN, tile_b=None,
                     n_splits=None):
    """out1, out2: (B, D) float; labels: (B, 1) float in {0, 1}.

    Returns a scalar float32 holding mean(loss) * 0.5 (matches the PyTorch module).
    """
    B, D = out1.shape
    assert out2.shape == (B, D)
    assert labels.shape == (B, 1)
    assert out1.dtype == out2.dtype

    labels = labels.astype(jnp.float32)          # tiny (B * 4 bytes)
    itemsize = jnp.dtype(out1.dtype).itemsize
    mult = _sublane_multiple(out1.dtype)

    vmem_cap = _vmem_capacity_bytes()
    per_block_cap = vmem_cap // 16               # 2 inputs x 2 buffers <= vmem/4

    if tile_b is None:
        tile_b = _pick_tile_b(B, D, out1.dtype, per_block_cap)
    assert tile_b == B or tile_b % mult == 0, (
        "tile_b must be a multiple of the sublane tile or equal the full batch")

    n_blocks = pl.cdiv(B, tile_b)
    if n_splits is None:
        n_splits = 2 if n_blocks >= 2 else 1     # use both TCs on v7x; free on 1-TC
    n_splits = max(1, min(n_splits, n_blocks))
    steps = pl.cdiv(n_blocks, n_splits)

    def idx_map(c, s):
        # Clamp so the trailing (masked) step of the last split never issues a
        # fully out-of-range DMA.
        return (jnp.minimum(c * steps + s, n_blocks - 1), 0)

    kernel = functools.partial(
        _contrastive_loss_kernel,
        margin=float(margin), batch=B, tile_b=tile_b, steps_per_split=steps)

    # VMEM accounting with lane-padding: a (tile_b, 1) f32 block costs tile_b*512 B.
    in_block_bytes = tile_b * D * itemsize
    labels_block_bytes = tile_b * 128 * 4
    out_block_bytes = 8 * 128 * 4
    need = (4 * in_block_bytes + 2 * labels_block_bytes + 2 * out_block_bytes
            + (4 << 20))                          # + slack for compiler scratch
    vmem_limit = max(need, 32 << 20)
    vmem_limit = int(min(vmem_limit, max(int(0.75 * vmem_cap), need)))

    cost = pl.CostEstimate(
        flops=B * (3 * D + 10),
        transcendentals=B,                        # one sqrt per row
        bytes_accessed=2 * B * D * itemsize + B * 4 + n_splits * 4)

    partials = pl.pallas_call(
        kernel,
        out_shape=jax.ShapeDtypeStruct((n_splits, 1, 1), jnp.float32),
        grid_spec=pltpu.PrefetchScalarGridSpec(
            num_scalar_prefetch=0,
            grid=(n_splits, steps),
            in_specs=[
                pl.BlockSpec((tile_b, D), idx_map),
                pl.BlockSpec((tile_b, D), idx_map),
                pl.BlockSpec((tile_b, 1), idx_map),   # labels streamed per tile
            ],
            # Each split owns its own (1, 1) partial; block is constant across the
            # arbitrary axis -> resident accumulator.
            out_specs=pl.BlockSpec((None, 1, 1), lambda c, s: (c, 0, 0)),
        ),
        compiler_params=pltpu.CompilerParams(
            dimension_semantics=("parallel", "arbitrary"),
            vmem_limit_bytes=vmem_limit),
        cost_estimate=cost,
    )(out1, out2, labels)

    # Combine per-core partials; mean over the true B, times 0.5.
    return jnp.sum(partials) * jnp.float32(0.5 / B)


def _reference(out1, out2, labels, margin=MARGIN):
    dist = jnp.sqrt(jnp.sum((out1 - out2) ** 2, axis=1, keepdims=True))
    loss = labels * dist ** 2 + (1 - labels) * jnp.clip(margin - dist, 0.0) ** 2
    return jnp.mean(loss) * 0.5


if __name__ == "__main__":
    # Case 1: small divisible batch, f32, auto tile (single step / single split).
    k1, k2, k3 = jax.random.split(jax.random.PRNGKey(0), 3)
    B, D = 16, 128
    a1 = jax.random.normal(k1, (B, D), dtype=jnp.float32)
    a2 = jax.random.normal(k2, (B, D), dtype=jnp.float32)
    lab1 = jax.random.bernoulli(k3, 0.5, (B, 1)).astype(jnp.float32)
    got1 = jax.block_until_ready(contrastive_loss(a1, a2, lab1))
    ref1 = _reference(a1, a2, lab1)
    assert jnp.allclose(got1, ref1, rtol=1e-5, atol=1e-5), (got1, ref1)

    # Case 2: ragged batch, non-128 feature dim, forced small tile -> exercises the
    # two-split grid, block-index clamping and in-kernel tail masking (no padding).
    k4, k5, k6 = jax.random.split(jax.random.PRNGKey(1), 3)
    B2, D2 = 37, 96
    b1 = jax.random.normal(k4, (B2, D2), dtype=jnp.float32)
    b2 = jax.random.normal(k5, (B2, D2), dtype=jnp.float32)
    lab2 = jax.random.bernoulli(k6, 0.5, (B2, 1)).astype(jnp.float32)
    got2 = jax.block_until_ready(contrastive_loss(b1, b2, lab2, tile_b=8))
    ref2 = _reference(b1, b2, lab2)
    assert jnp.allclose(got2, ref2, rtol=1e-5, atol=1e-5), (got2, ref2)

    # Case 3: bf16 inputs streamed natively (halved HBM bytes), upcast in-kernel.
    k7, k8, k9 = jax.random.split(jax.random.PRNGKey(2), 3)
    B3, D3 = 40, 128
    c1 = jax.random.normal(k7, (B3, D3), dtype=jnp.bfloat16)
    c2 = jax.random.normal(k8, (B3, D3), dtype=jnp.bfloat16)
    lab3 = jax.random.bernoulli(k9, 0.5, (B3, 1)).astype(jnp.float32)
    got3 = jax.block_until_ready(contrastive_loss(c1, c2, lab3, tile_b=16))
    ref3 = _reference(c1.astype(jnp.float32), c2.astype(jnp.float32), lab3)
    assert jnp.allclose(got3, ref3, rtol=1e-3, atol=1e-3), (got3, ref3)

    print("KERNEL_OK")
</pallas_src>

<mosaic_0001>
module attributes {stable_mosaic.version = 11 : i64} {
  func.func @_contrastive_loss_kernel(%arg0: i32, %arg1: i32, %arg2: memref<16x128xf32, #tpu.memory_space<vmem>>, %arg3: memref<16x128xf32, #tpu.memory_space<vmem>>, %arg4: memref<16x1xf32, #tpu.memory_space<vmem>>, %arg5: memref<1x1x1xf32, #tpu.memory_space<vmem>>) attributes {dimension_semantics = [#tpu.dimension_semantics<parallel>, #tpu.dimension_semantics<arbitrary>], iteration_bounds = array<i64: 1, 1>, scalar_prefetch = 0 : i64, scratch_operands = 0 : i64, tpu.core_type = #tpu.core_type<tc>, window_params = [{transform_indices = @transform_0, window_bounds = array<i64: 16, 128>}, {transform_indices = @transform_1, window_bounds = array<i64: 16, 128>}, {transform_indices = @transform_2, window_bounds = array<i64: 16, 1>}, {transform_indices = @transform_3, window_bounds = array<i64: 1, 1, 1>}]} {
    %c0_i32 = arith.constant 0 : i32
    %0 = arith.cmpi eq, %arg1, %c0_i32 : i32
    %1 = arith.extui %0 : i1 to i32
    %c0_i32_0 = arith.constant 0 : i32
    %2 = arith.cmpi ne, %1, %c0_i32_0 : i32
    scf.if %2 {
      %cst_18 = arith.constant 0.000000e+00 : f32
      %39 = vector.broadcast %cst_18 : f32 to vector<1x1xf32>
      %c0_19 = arith.constant 0 : index
      %c0_20 = arith.constant 0 : index
      %c0_21 = arith.constant 0 : index
      %40 = vector.load %arg5[%c0_19, %c0_20, %c0_21] : memref<1x1x1xf32, #tpu.memory_space<vmem>>, vector<1x1x1xf32>
      %41 = vector.shape_cast %40 : vector<1x1x1xf32> to vector<1x1xf32>
      %42 = vector.shape_cast %39 : vector<1x1xf32> to vector<1x1x1xf32>
      tpu.vector_store %arg5[%c0_19, %c0_20, %c0_21], %42 {strides = array<i32>} : memref<1x1x1xf32, #tpu.memory_space<vmem>>, vector<1x1x1xf32>,
    } else {
    }
    %c0 = arith.constant 0 : index
    %c0_1 = arith.constant 0 : index
    %3 = vector.load %arg2[%c0, %c0_1] : memref<16x128xf32, #tpu.memory_space<vmem>>, vector<16x128xf32>
    %c0_2 = arith.constant 0 : index
    %c0_3 = arith.constant 0 : index
    %4 = vector.load %arg3[%c0_2, %c0_3] : memref<16x128xf32, #tpu.memory_space<vmem>>, vector<16x128xf32>
    %c0_4 = arith.constant 0 : index
    %c0_5 = arith.constant 0 : index
    %5 = vector.load %arg4[%c0_4, %c0_5] : memref<16x1xf32, #tpu.memory_space<vmem>>, vector<16x1xf32>
    %6 = arith.subf %3, %4 : vector<16x128xf32>
    %7 = arith.mulf %6, %6 : vector<16x128xf32>
    %cst = arith.constant dense<0.000000e+00> : vector<16xf32>
    %8 = vector.multi_reduction <add>, %7, %cst [1] : vector<16x128xf32> to vector<16xf32>
    %9 = vector.shape_cast %8 : vector<16xf32> to vector<16x1xf32>
    %10 = math.sqrt %9 : vector<16x1xf32>
    %cst_6 = arith.constant 1.000000e+00 : f32
    %11 = vector.broadcast %cst_6 : f32 to vector<16x1xf32>
    %12 = arith.subf %11, %10 : vector<16x1xf32>
    %cst_7 = arith.constant 0.000000e+00 : f32
    %13 = vector.broadcast %cst_7 : f32 to vector<16x1xf32>
    %14 = arith.maximumf %12, %13 : vector<16x1xf32>
    %15 = arith.mulf %5, %9 : vector<16x1xf32>
    %cst_8 = arith.constant 1.000000e+00 : f32
    %16 = vector.broadcast %cst_8 : f32 to vector<16x1xf32>
    %17 = arith.subf %16, %5 : vector<16x1xf32>
    %18 = arith.mulf %14, %14 : vector<16x1xf32>
    %19 = arith.mulf %17, %18 : vector<16x1xf32>
    %20 = arith.addf %15, %19 : vector<16x1xf32>
    %c1_i32 = arith.constant 1 : i32
    %21 = arith.muli %arg0, %c1_i32 : i32
    %22 = arith.addi %21, %arg1 : i32
    %c16_i32 = arith.constant 16 : i32
    %23 = arith.muli %22, %c16_i32 : i32
    %24 = tpu.iota {dimensions = array<i32: 0>} : vector<16x1xi32>
    %25 = vector.broadcast %23 : i32 to vector<16x1xi32>
    %26 = arith.addi %25, %24 : vector<16x1xi32>
    %c16_i32_9 = arith.constant 16 : i32
    %27 = vector.broadcast %c16_i32_9 : i32 to vector<16x1xi32>
    %28 = arith.cmpi slt, %26, %27 : vector<16x1xi32>
    %cst_10 = arith.constant 0.000000e+00 : f32
    %29 = vector.broadcast %cst_10 : f32 to vector<16x1xf32>
    %30 = arith.select %28, %20, %29 : vector<16x1xi1>, vector<16x1xf32>
    %c0_11 = arith.constant 0 : index
    %c0_12 = arith.constant 0 : index
    %c0_13 = arith.constant 0 : index
    %31 = vector.load %arg5[%c0_11, %c0_12, %c0_13] : memref<1x1x1xf32, #tpu.memory_space<vmem>>, vector<1x1x1xf32>
    %32 = vector.shape_cast %31 : vector<1x1x1xf32> to vector<1x1xf32>
    %cst_14 = arith.constant dense<0.000000e+00> : vector<1xf32>
    %33 = vector.multi_reduction <add>, %30, %cst_14 [0] : vector<16x1xf32> to vector<1xf32>
    %34 = vector.shape_cast %33 : vector<1xf32> to vector<1x1xf32>
    %35 = arith.addf %32, %34 : vector<1x1xf32>
    %c0_15 = arith.constant 0 : index
    %c0_16 = arith.constant 0 : index
    %c0_17 = arith.constant 0 : index
    %36 = vector.load %arg5[%c0_15, %c0_16, %c0_17] : memref<1x1x1xf32, #tpu.memory_space<vmem>>, vector<1x1x1xf32>
    %37 = vector.shape_cast %36 : vector<1x1x1xf32> to vector<1x1xf32>
    %38 = vector.shape_cast %35 : vector<1x1xf32> to vector<1x1x1xf32>
    tpu.vector_store %arg5[%c0_15, %c0_16, %c0_17], %38 {strides = array<i32>} : memref<1x1x1xf32, #tpu.memory_space<vmem>>, vector<1x1x1xf32>,
    return
  }
  func.func @transform_0(%arg0: i32, %arg1: i32) -> (i32, i32) {
    %c1_i32 = arith.constant 1 : i32
    %0 = arith.muli %arg0, %c1_i32 : i32
    %1 = arith.addi %0, %arg1 : i32
    %c0_i32 = arith.constant 0 : i32
    %2 = arith.minsi %1, %c0_i32 : i32
    %c0_i32_0 = arith.constant 0 : i32
    %c0_i32_1 = arith.constant 0 : i32
    return %2, %c0_i32_0 : i32, i32
  }
  func.func @transform_1(%arg0: i32, %arg1: i32) -> (i32, i32) {
    %c1_i32 = arith.constant 1 : i32
    %0 = arith.muli %arg0, %c1_i32 : i32
    %1 = arith.addi %0, %arg1 : i32
    %c0_i32 = arith.constant 0 : i32
    %2 = arith.minsi %1, %c0_i32 : i32
    %c0_i32_0 = arith.constant 0 : i32
    %c0_i32_1 = arith.constant 0 : i32
    return %2, %c0_i32_0 : i32, i32
  }
  func.func @transform_2(%arg0: i32, %arg1: i32) -> (i32, i32) {
    %c1_i32 = arith.constant 1 : i32
    %0 = arith.muli %arg0, %c1_i32 : i32
    %1 = arith.addi %0, %arg1 : i32
    %c0_i32 = arith.constant 0 : i32
    %2 = arith.minsi %1, %c0_i32 : i32
    %c0_i32_0 = arith.constant 0 : i32
    %c0_i32_1 = arith.constant 0 : i32
    return %2, %c0_i32_0 : i32, i32
  }
  func.func @transform_3(%arg0: i32, %arg1: i32) -> (i32, i32, i32) {
    %c0_i32 = arith.constant 0 : i32
    %c0_i32_0 = arith.constant 0 : i32
    %c0_i32_1 = arith.constant 0 : i32
    return %arg0, %c0_i32, %c0_i32_0 : i32, i32, i32
  }
}

</mosaic_0001>

<bundles_post_ra>
// kernel: tpu_custom_call.1
= control target key start
LH: loop header
LB: loop body
LE: loop exit
PB: predicated region body
PF: predicated region fallthrough
CT: control target
= control target key end

     0   :  { %8 = vsyncpa [#allocation3], 0  ;;  %s304_s0 = inlined_call_operand.vmem [shape: f32[16,128], index: 0, kind: input, shape index: {}]   ;;  %s305_s1 = inlined_call_operand.hbm [shape: f32[16,128], index: 1, kind: input, shape index: {}]   ;;  %s306_s2 = inlined_call_operand.vmem [shape: f32[16,1], index: 2, kind: input, shape index: {}]   ;;  %s307_s3 = inlined_call_operand.hbm [shape: f32[1,1,1], index: 3, kind: output, shape index: {}]  }
   0x1   :  { %9 = vsyncpa [#allocation4], 0  ;;  %s259_s12 = smov [#allocation2]  }
   0x2   :  { %s35_s13 = sshll.u32 %s259_s12, 4  ;;  %s36_s13 = int_to_ptr.vmem [resolvable:$true] %s35_s13 }
   0x3   :  { %s223_s14 = scalar_lea.vmem %s36_s13, 256  ;;  %p228_p1 = scmp.lt.s32.totalorder %s36_s13, %s36_s13 }
   0x4   :  { %p224_p0 = scmp.ne.s32.totalorder %s36_s13, %s223_s14  ;;  %p229_p2 = scmp.lt.s32.totalorder %s223_s14, %s223_s14 }
   0x6   :  { %p230_p3 = por %p229_p2, %p228_p1 }
   0x8   :  { %p231_p4 = pnand %p230_p3, %p224_p0 }
   0xa   :  { %234 = shalt.err (!%p231_p4)
}
   0xb   :  { %s260_s15 = smov 128   ;;  %s261_s16 = smov 8  }
   0xc   :  { %41 = dma.hbm_to_vmem [thread:$0]  %s305_s1, 256, %s36_s13, [#allocation3], %s260_s15, %s260_s15, %s261_s16  }
   0xd   :  { %255 = dma.done.wait [#allocation3], 256  }
   0xe   :  { %256 = vsyncadd [#allocation3], 4294967040  ;;  %v109_v0 = vld [vmem:[%s304_s0] sm:$0xff]  ;;  %v110_v2 = vld [vmem:[%s304_s0 + $0x8] sm:$0xff]  ;;  %vm107_vm0 = vcmask 0   ;;  %v262_v8 = vmov 0.0  }
   0xf   :  { %v111_v1 = vld [vmem:[#allocation2] sm:$0xff]  ;;  %v112_v4 = vld [vmem:[#allocation2 + $0x8] sm:$0xff]  ;;  %108 = vst.msk [vmem:[#allocation5] sm:$0x1] %vm107_vm0, %v262_v8  ;;  %vm164_vm5 = vcmask 7168  }
  0x10   :  { %v115_v3 = vsub.f32 %v109_v0, %v111_v1  ;;  %v116_v5 = vsub.f32 %v110_v2, %v112_v4  ;;  %v113_v19 = vld [vmem:[%s306_s2] sm:$0xff]  ;;  %v114_v27 = vld [vmem:[%s306_s2 + $0x8] sm:$0xff]  ;;  %s263_s2 = smov [#allocation5]  }
  0x11   :  { %v143_v21 = vsub.f32 1.0, %v113_v19  ;;  %v144_v29 = vsub.f32 1.0, %v114_v27  ;;  %s183_s25 = sshll.u32 %s263_s2, 4  ;;  %s184_s25 = int_to_ptr.vmem [resolvable:$true] %s183_s25 }
  0x12   :  { %v117_v6 = vmul.f32 %v115_v3, %v115_v3  ;;  %v118_v7 = vmul.f32 %v116_v5, %v116_v5  ;;  %s235_s26 = scalar_lea.vmem %s184_s25, 16  ;;  %s239_s27 = scalar_lea.vmem %s184_s25, 32 }
  0x13   :  { %p236_p5 = scmp.ne.s32.totalorder %s184_s25, %s235_s26  ;;  %p240_p6 = scmp.lt.s32.totalorder %s184_s25, %s184_s25 }
  0x14   :  { %119 = vadd.xlane.f32.xlu0 %v117_v6  ;;  %p241_p7 = scmp.lt.s32.totalorder %s239_s27, %s235_s26 }
  0x16   :  { %v163_v45 = vld [vmem:[#allocation5] sm:$0x1]  ;;  %p242_p8 = por %p241_p7, %p240_p6 }
  0x18   :  { %121 = vadd.xlane.f32.xlu0 %v118_v7  ;;  %p243_p9 = pnand %p242_p8, %p236_p5 }
  0x9d   :  { %v120_v9 = vpop.xlane.xlu0 %119 }
  0x9e   :  { %211 = vrsqrt.f32 %v120_v9  ;;  %vm125_vm1 = vcmp.eq.f32.partialorder %v120_v9, inf  ;;  %v128_v13 = vand.u32 2147483648, %v120_v9  ;;  %vm127_vm2 = vcmp.eq.f32.partialorder %v120_v9, 0.0 }
  0x9f   :  { %v141_v31 = vmul.f32 %v120_v9, %v113_v19 }
  0xa1   :  { %v122_v10 = vpop.xlane.xlu0 %121 }
  0xa2   :  { %213 = vrsqrt.f32 %v122_v10  ;;  %vm132_vm3 = vcmp.eq.f32.partialorder %v122_v10, inf  ;;  %v135_v20 = vand.u32 2147483648, %v122_v10  ;;  %vm134_vm4 = vcmp.eq.f32.partialorder %v122_v10, 0.0 }
  0xa3   :  { %v142_v34 = vmul.f32 %v122_v10, %v114_v27 }
  0xab   :  { %v212_v11 = vpop.eup %211 }
  0xac   :  { %v124_v12 = vmul.f32 %v212_v11, %v120_v9 }
  0xae   :  { %v126_v14 = vsel %vm125_vm1, %v120_v9, %v124_v12 }
  0xaf   :  { %v214_v15 = vpop.eup %213  ;;  %v129_v16 = vsel %vm127_vm2, %v128_v13, %v126_v14 }
  0xb0   :  { %v137_v17 = vsub.f32 1.0, %v129_v16  ;;  %v131_v18 = vmul.f32 %v214_v15, %v122_v10 }
  0xb2   :  { %v139_v22 = vmax.f32 %v137_v17, 0.0  ;;  %v133_v23 = vsel %vm132_vm3, %v122_v10, %v131_v18 }
  0xb3   :  { %v136_v24 = vsel %vm134_vm4, %v135_v20, %v133_v23 }
  0xb4   :  { %v145_v25 = vmul.f32 %v139_v22, %v139_v22  ;;  %v138_v26 = vsub.f32 1.0, %v136_v24 }
  0xb6   :  { %v147_v28 = vmul.f32 %v145_v25, %v143_v21  ;;  %v140_v30 = vmax.f32 %v138_v26, 0.0 }
  0xb8   :  { %v146_v32 = vmul.f32 %v140_v30, %v140_v30  ;;  %v149_v33 = vadd.f32 %v147_v28, %v141_v31 }
  0xba   :  { %v148_v35 = vmul.f32 %v146_v32, %v144_v29  ;;  %v165_v37 = vsel %vm164_vm5, %v149_v33, 0.0 }
  0xbc   :  { %v150_v36 = vadd.f32 %v148_v35, %v142_v34 }
  0xbe   :  { %v166_v38 = vsel %vm164_vm5, %v150_v36, 0.0 }
  0xbf   :  { %v167_v39 = vadd.f32 %v166_v38, %v165_v37 }
  0xc1   :  { %v168_v40 = vrot.slane %v167_v39, 4 }
  0xc3   :  { %v169_v41 = vadd.f32 %v168_v40, %v167_v39 }
  0xc5   :  { %v170_v42 = vrot.slane %v169_v41, 2 }
  0xc7   :  { %v171_v43 = vadd.f32 %v170_v42, %v169_v41 }
  0xc9   :  { %v172_v44 = vrot.slane %v171_v43, 1 }
  0xcb   :  { %v173_v46 = vadd.f32 %v172_v44, %v171_v43 }
  0xcd   :  { %v174_v47 = vadd.f32 %v173_v46, %v163_v45 }
  0xcf   :  { %176 = vst.msk [vmem:[#allocation5] sm:$0x1] %vm107_vm0, %v174_v47 }
  0xd0   :  { %246 = shalt.err (!%p243_p9)
}
  0xd1   :  { %186 = dma.vmem_to_hbm [thread:$0]  %s184_s25, 16, %s307_s3, [#allocation4]  }
  0xd2   :  { %257 = dma.done.wait [#allocation4], 16  }
  0xd3   :  { %258 = vsyncadd [#allocation4], 4294967280 }
  0xd4   :  { %190 = vsyncpa [#allocation3], 1 }
  0xd5   :  { %191 = vsyncpa [#allocation4], 1 }

</bundles_post_ra>
